<compile_context>
chip_gen: v7x
topology: tpu7x:2x2x1
jax: 0.10.0
libtpu: 0.0.40
codegen_flags: <defaults>
</compile_context>

<pallas_src>
import functools

import jax
import jax.numpy as jnp
from jax import lax
from jax.experimental import pallas as pl
from jax.experimental.pallas import tpu as pltpu


_GATHER_WINDOW = 8  # outstanding row DMAs during the fused embedding gather


def _round_up(x, m):
    return (x + m - 1) // m * m


def _biglm_kernel(idx_ref, emb_hbm, pt_ref, yt_ref, x_buf, gather_sem, acc_ref,
                  *, tn, tk):
    n = pl.program_id(0)
    c = pl.program_id(1)
    k = pl.program_id(2)

    # ---- fused embedding gather: once per N-tile (at c == 0, k == 0) -------
    @pl.when(jnp.logical_and(c == 0, k == 0))
    def _gather():
        base = n * tn

        def _copy(row, r, slot):
            return pltpu.make_async_copy(
                emb_hbm.at[pl.ds(row, 1)],    # (1, h_pad) row in HBM
                x_buf.at[pl.ds(r, 1)],        # (1, h_pad) row in VMEM
                gather_sem.at[slot],
            )

        def _start(r):
            _copy(idx_ref[base + r], r, r % _GATHER_WINDOW).start()

        # Prime the DMA window (static Python loop, small).
        for r in range(min(_GATHER_WINDOW, tn)):
            _start(r)

        def _body(r, carry):
            # Wait for row r (frees its semaphore slot) ...
            _copy(0, r, r % _GATHER_WINDOW).wait()

            # ... then issue the next row into the freed slot.
            @pl.when(r + _GATHER_WINDOW < tn)
            def _():
                _start(r + _GATHER_WINDOW)

            return carry

        lax.fori_loop(0, tn, _body, 0)

    # ---- blocked matmul with f32 accumulator --------------------------------
    @pl.when(k == 0)
    def _init():
        acc_ref[...] = jnp.zeros_like(acc_ref)

    x_tile = x_buf[:, pl.ds(pl.multiple_of(k * tk, tk), tk)]        # (tn, tk)
    acc_ref[...] += jnp.dot(x_tile, pt_ref[...],
                            preferred_element_type=jnp.float32)

    @pl.when(k == pl.num_programs(2) - 1)
    def _finalize():
        yt_ref[...] = acc_ref[...]          # lane-dense (vocab-minor) f32 store


@functools.partial(jax.jit, static_argnames=("tn", "tc", "tk"))
def biglm_forward(indices, embedding_weight, projection_matrix, *,
                  tn=128, tc=128, tk=128):
    """Pallas BigLM.forward:  Y = projection_matrix @ embedding(indices).T.

    indices:            (N,)   int
    embedding_weight:   (C, H) float32
    projection_matrix:  (C, H) float32
    returns Y:          (C, N) float32
    """
    C, H = embedding_weight.shape
    N = indices.shape[0]

    n_pad = _round_up(N, tn)
    c_pad = _round_up(C, tc)
    h_pad = _round_up(H, tk)

    idx = jnp.pad(indices.astype(jnp.int32), (0, n_pad - N))
    emb = jnp.pad(embedding_weight.astype(jnp.float32),
                  ((0, c_pad - C), (0, h_pad - H)))
    # P^T built once in the wrapper -> standard (M,K)x(K,N) MXU contraction in
    # the kernel and a lane-dense (vocab-minor) output.
    proj_t = jnp.pad(projection_matrix.astype(jnp.float32),
                     ((0, c_pad - C), (0, h_pad - H))).T             # (h_pad, c_pad)

    grid = (n_pad // tn, c_pad // tc, h_pad // tk)

    yt = pl.pallas_call(
        functools.partial(_biglm_kernel, tn=tn, tk=tk),
        out_shape=jax.ShapeDtypeStruct((n_pad, c_pad), jnp.float32),
        grid_spec=pltpu.PrefetchScalarGridSpec(
            num_scalar_prefetch=1,                       # indices -> SMEM
            grid=grid,
            in_specs=[
                pl.BlockSpec(memory_space=pl.ANY),       # embedding table (HBM)
                pl.BlockSpec((tk, tc), lambda n, c, k, idx: (k, c)),   # P^T tile
            ],
            out_specs=pl.BlockSpec((tn, tc), lambda n, c, k, idx: (n, c)),
            scratch_shapes=[
                pltpu.VMEM((tn, h_pad), jnp.float32),           # gathered X rows
                pltpu.SemaphoreType.DMA((_GATHER_WINDOW,)),     # gather sems
                pltpu.VMEM((tn, tc), jnp.float32),              # f32 accumulator
            ],
        ),
        compiler_params=pltpu.CompilerParams(
            # N-tiles are independent -> megacore parallel; C/H stay on one
            # core because the gathered X tile is reused across them.
            dimension_semantics=("parallel", "arbitrary", "arbitrary"),
            vmem_limit_bytes=64 * 1024 * 1024,
        ),
    )(idx, emb, proj_t)

    # Y = P @ X.T = (X @ P^T)^T ; drop the alignment padding.
    return yt[:N, :C].T


if __name__ == "__main__":
    # Small shapes consistent with the module (unaligned on purpose to
    # exercise the padding path).
    num_chars = 16     # vocabulary size C
    hidden_size = 8    # embedding dim H
    seq_len = 8        # number of indices N

    key = jax.random.PRNGKey(0)
    k_emb, k_proj, k_idx = jax.random.split(key, 3)

    # nn.Embedding default init: N(0, 1); torch.rand: U[0, 1).
    embedding_weight = jax.random.normal(
        k_emb, (num_chars, hidden_size), dtype=jnp.float32)
    projection_matrix = jax.random.uniform(
        k_proj, (num_chars, hidden_size), dtype=jnp.float32)
    indices = jax.random.randint(
        k_idx, (seq_len,), 0, num_chars, dtype=jnp.int32)

    y = biglm_forward(indices, embedding_weight, projection_matrix)
    y = jax.block_until_ready(y)

    # Reference (full-f32 precision) check against plain JAX.
    x_ref = jnp.take(embedding_weight, indices, axis=0)
    y_ref = jnp.matmul(projection_matrix, x_ref.T,
                       precision=jax.lax.Precision.HIGHEST)
    assert y.shape == (num_chars, seq_len)
    assert jnp.allclose(y, y_ref, atol=1e-4, rtol=1e-4), float(
        jnp.max(jnp.abs(y - y_ref)))

    print("KERNEL_OK")
</pallas_src>

<mosaic_0001>
module attributes {stable_mosaic.version = 11 : i64} {
  func.func @_biglm_kernel(%arg0: i32, %arg1: i32, %arg2: i32, %arg3: memref<128xi32, #tpu.memory_space<smem>>, %arg4: memref<128x128xf32, #tpu.memory_space<any>>, %arg5: memref<128x128xf32, #tpu.memory_space<vmem>>, %arg6: memref<128x128xf32, #tpu.memory_space<vmem>>, %arg7: memref<128x128xf32, #tpu.memory_space<vmem>>, %arg8: memref<8x!tpu.dma_semaphore, #tpu.memory_space<semaphore_mem>>, %arg9: memref<128x128xf32, #tpu.memory_space<vmem>>) attributes {dimension_semantics = [#tpu.dimension_semantics<parallel>, #tpu.dimension_semantics<arbitrary>, #tpu.dimension_semantics<arbitrary>], iteration_bounds = array<i64: 1, 1, 1>, scalar_prefetch = 1 : i64, scratch_operands = 3 : i64, tpu.core_type = #tpu.core_type<tc>, window_params = [{}, {transform_indices = @transform_1, window_bounds = array<i64: 128, 128>}, {transform_indices = @transform_2, window_bounds = array<i64: 128, 128>}]} {
    %c0_i32 = arith.constant 0 : i32
    %0 = arith.cmpi eq, %arg1, %c0_i32 : i32
    %c0_i32_0 = arith.constant 0 : i32
    %1 = arith.cmpi eq, %arg2, %c0_i32_0 : i32
    %2 = arith.andi %0, %1 : i1
    %3 = arith.extui %2 : i1 to i32
    %c0_i32_1 = arith.constant 0 : i32
    %4 = arith.cmpi ne, %3, %c0_i32_1 : i32
    scf.if %4 {
      %c128_i32_12 = arith.constant 128 : i32
      %20 = arith.muli %arg0, %c128_i32_12 : i32
      %c0_i32_13 = arith.constant 0 : i32
      %21 = arith.addi %20, %c0_i32_13 : i32
      %22 = arith.index_cast %21 : i32 to index
      %23 = memref.load %arg3[%22] : memref<128xi32, #tpu.memory_space<smem>>
      %c0_i32_14 = arith.constant 0 : i32
      %c0_i32_15 = arith.constant 0 : i32
      %24 = tpu.memref_slice %arg4[%23, %c0_i32_15] : memref<128x128xf32, #tpu.memory_space<any>> -> memref<1x128xf32, #tpu.memory_space<any>>
      %c0_i32_16 = arith.constant 0 : i32
      %c0_i32_17 = arith.constant 0 : i32
      %25 = tpu.memref_slice %arg7[%c0_i32_16, %c0_i32_17] : memref<128x128xf32, #tpu.memory_space<vmem>> -> memref<1x128xf32, #tpu.memory_space<vmem>>
      %26 = tpu.memref_slice %arg8[%c0_i32_14] : memref<8x!tpu.dma_semaphore, #tpu.memory_space<semaphore_mem>> -> memref<1x!tpu.dma_semaphore, #tpu.memory_space<semaphore_mem>>
      %27 = tpu.memref_squeeze %26 : memref<1x!tpu.dma_semaphore, #tpu.memory_space<semaphore_mem>> -> memref<!tpu.dma_semaphore, #tpu.memory_space<semaphore_mem>>
      tpu.enqueue_dma source(%24 : memref<1x128xf32, #tpu.memory_space<any>>) target(%25 : memref<1x128xf32, #tpu.memory_space<vmem>>) target_semaphore(%27 : memref<!tpu.dma_semaphore, #tpu.memory_space<semaphore_mem>>)
      %c1_i32 = arith.constant 1 : i32
      %28 = arith.addi %20, %c1_i32 : i32
      %29 = arith.index_cast %28 : i32 to index
      %30 = memref.load %arg3[%29] : memref<128xi32, #tpu.memory_space<smem>>
      %c1_i32_18 = arith.constant 1 : i32
      %c0_i32_19 = arith.constant 0 : i32
      %31 = tpu.memref_slice %arg4[%30, %c0_i32_19] : memref<128x128xf32, #tpu.memory_space<any>> -> memref<1x128xf32, #tpu.memory_space<any>>
      %c1_i32_20 = arith.constant 1 : i32
      %c0_i32_21 = arith.constant 0 : i32
      %32 = tpu.memref_slice %arg7[%c1_i32_20, %c0_i32_21] : memref<128x128xf32, #tpu.memory_space<vmem>> -> memref<1x128xf32, #tpu.memory_space<vmem>>
      %33 = tpu.memref_slice %arg8[%c1_i32_18] : memref<8x!tpu.dma_semaphore, #tpu.memory_space<semaphore_mem>> -> memref<1x!tpu.dma_semaphore, #tpu.memory_space<semaphore_mem>>
      %34 = tpu.memref_squeeze %33 : memref<1x!tpu.dma_semaphore, #tpu.memory_space<semaphore_mem>> -> memref<!tpu.dma_semaphore, #tpu.memory_space<semaphore_mem>>
      tpu.enqueue_dma source(%31 : memref<1x128xf32, #tpu.memory_space<any>>) target(%32 : memref<1x128xf32, #tpu.memory_space<vmem>>) target_semaphore(%34 : memref<!tpu.dma_semaphore, #tpu.memory_space<semaphore_mem>>)
      %c2_i32 = arith.constant 2 : i32
      %35 = arith.addi %20, %c2_i32 : i32
      %36 = arith.index_cast %35 : i32 to index
      %37 = memref.load %arg3[%36] : memref<128xi32, #tpu.memory_space<smem>>
      %c2_i32_22 = arith.constant 2 : i32
      %c0_i32_23 = arith.constant 0 : i32
      %38 = tpu.memref_slice %arg4[%37, %c0_i32_23] : memref<128x128xf32, #tpu.memory_space<any>> -> memref<1x128xf32, #tpu.memory_space<any>>
      %c2_i32_24 = arith.constant 2 : i32
      %c0_i32_25 = arith.constant 0 : i32
      %39 = tpu.memref_slice %arg7[%c2_i32_24, %c0_i32_25] : memref<128x128xf32, #tpu.memory_space<vmem>> -> memref<1x128xf32, #tpu.memory_space<vmem>>
      %40 = tpu.memref_slice %arg8[%c2_i32_22] : memref<8x!tpu.dma_semaphore, #tpu.memory_space<semaphore_mem>> -> memref<1x!tpu.dma_semaphore, #tpu.memory_space<semaphore_mem>>
      %41 = tpu.memref_squeeze %40 : memref<1x!tpu.dma_semaphore, #tpu.memory_space<semaphore_mem>> -> memref<!tpu.dma_semaphore, #tpu.memory_space<semaphore_mem>>
      tpu.enqueue_dma source(%38 : memref<1x128xf32, #tpu.memory_space<any>>) target(%39 : memref<1x128xf32, #tpu.memory_space<vmem>>) target_semaphore(%41 : memref<!tpu.dma_semaphore, #tpu.memory_space<semaphore_mem>>)
      %c3_i32 = arith.constant 3 : i32
      %42 = arith.addi %20, %c3_i32 : i32
      %43 = arith.index_cast %42 : i32 to index
      %44 = memref.load %arg3[%43] : memref<128xi32, #tpu.memory_space<smem>>
      %c3_i32_26 = arith.constant 3 : i32
      %c0_i32_27 = arith.constant 0 : i32
      %45 = tpu.memref_slice %arg4[%44, %c0_i32_27] : memref<128x128xf32, #tpu.memory_space<any>> -> memref<1x128xf32, #tpu.memory_space<any>>
      %c3_i32_28 = arith.constant 3 : i32
      %c0_i32_29 = arith.constant 0 : i32
      %46 = tpu.memref_slice %arg7[%c3_i32_28, %c0_i32_29] : memref<128x128xf32, #tpu.memory_space<vmem>> -> memref<1x128xf32, #tpu.memory_space<vmem>>
      %47 = tpu.memref_slice %arg8[%c3_i32_26] : memref<8x!tpu.dma_semaphore, #tpu.memory_space<semaphore_mem>> -> memref<1x!tpu.dma_semaphore, #tpu.memory_space<semaphore_mem>>
      %48 = tpu.memref_squeeze %47 : memref<1x!tpu.dma_semaphore, #tpu.memory_space<semaphore_mem>> -> memref<!tpu.dma_semaphore, #tpu.memory_space<semaphore_mem>>
      tpu.enqueue_dma source(%45 : memref<1x128xf32, #tpu.memory_space<any>>) target(%46 : memref<1x128xf32, #tpu.memory_space<vmem>>) target_semaphore(%48 : memref<!tpu.dma_semaphore, #tpu.memory_space<semaphore_mem>>)
      %c4_i32 = arith.constant 4 : i32
      %49 = arith.addi %20, %c4_i32 : i32
      %50 = arith.index_cast %49 : i32 to index
      %51 = memref.load %arg3[%50] : memref<128xi32, #tpu.memory_space<smem>>
      %c4_i32_30 = arith.constant 4 : i32
      %c0_i32_31 = arith.constant 0 : i32
      %52 = tpu.memref_slice %arg4[%51, %c0_i32_31] : memref<128x128xf32, #tpu.memory_space<any>> -> memref<1x128xf32, #tpu.memory_space<any>>
      %c4_i32_32 = arith.constant 4 : i32
      %c0_i32_33 = arith.constant 0 : i32
      %53 = tpu.memref_slice %arg7[%c4_i32_32, %c0_i32_33] : memref<128x128xf32, #tpu.memory_space<vmem>> -> memref<1x128xf32, #tpu.memory_space<vmem>>
      %54 = tpu.memref_slice %arg8[%c4_i32_30] : memref<8x!tpu.dma_semaphore, #tpu.memory_space<semaphore_mem>> -> memref<1x!tpu.dma_semaphore, #tpu.memory_space<semaphore_mem>>
      %55 = tpu.memref_squeeze %54 : memref<1x!tpu.dma_semaphore, #tpu.memory_space<semaphore_mem>> -> memref<!tpu.dma_semaphore, #tpu.memory_space<semaphore_mem>>
      tpu.enqueue_dma source(%52 : memref<1x128xf32, #tpu.memory_space<any>>) target(%53 : memref<1x128xf32, #tpu.memory_space<vmem>>) target_semaphore(%55 : memref<!tpu.dma_semaphore, #tpu.memory_space<semaphore_mem>>)
      %c5_i32 = arith.constant 5 : i32
      %56 = arith.addi %20, %c5_i32 : i32
      %57 = arith.index_cast %56 : i32 to index
      %58 = memref.load %arg3[%57] : memref<128xi32, #tpu.memory_space<smem>>
      %c5_i32_34 = arith.constant 5 : i32
      %c0_i32_35 = arith.constant 0 : i32
      %59 = tpu.memref_slice %arg4[%58, %c0_i32_35] : memref<128x128xf32, #tpu.memory_space<any>> -> memref<1x128xf32, #tpu.memory_space<any>>
      %c5_i32_36 = arith.constant 5 : i32
      %c0_i32_37 = arith.constant 0 : i32
      %60 = tpu.memref_slice %arg7[%c5_i32_36, %c0_i32_37] : memref<128x128xf32, #tpu.memory_space<vmem>> -> memref<1x128xf32, #tpu.memory_space<vmem>>
      %61 = tpu.memref_slice %arg8[%c5_i32_34] : memref<8x!tpu.dma_semaphore, #tpu.memory_space<semaphore_mem>> -> memref<1x!tpu.dma_semaphore, #tpu.memory_space<semaphore_mem>>
      %62 = tpu.memref_squeeze %61 : memref<1x!tpu.dma_semaphore, #tpu.memory_space<semaphore_mem>> -> memref<!tpu.dma_semaphore, #tpu.memory_space<semaphore_mem>>
      tpu.enqueue_dma source(%59 : memref<1x128xf32, #tpu.memory_space<any>>) target(%60 : memref<1x128xf32, #tpu.memory_space<vmem>>) target_semaphore(%62 : memref<!tpu.dma_semaphore, #tpu.memory_space<semaphore_mem>>)
      %c6_i32 = arith.constant 6 : i32
      %63 = arith.addi %20, %c6_i32 : i32
      %64 = arith.index_cast %63 : i32 to index
      %65 = memref.load %arg3[%64] : memref<128xi32, #tpu.memory_space<smem>>
      %c6_i32_38 = arith.constant 6 : i32
      %c0_i32_39 = arith.constant 0 : i32
      %66 = tpu.memref_slice %arg4[%65, %c0_i32_39] : memref<128x128xf32, #tpu.memory_space<any>> -> memref<1x128xf32, #tpu.memory_space<any>>
      %c6_i32_40 = arith.constant 6 : i32
      %c0_i32_41 = arith.constant 0 : i32
      %67 = tpu.memref_slice %arg7[%c6_i32_40, %c0_i32_41] : memref<128x128xf32, #tpu.memory_space<vmem>> -> memref<1x128xf32, #tpu.memory_space<vmem>>
      %68 = tpu.memref_slice %arg8[%c6_i32_38] : memref<8x!tpu.dma_semaphore, #tpu.memory_space<semaphore_mem>> -> memref<1x!tpu.dma_semaphore, #tpu.memory_space<semaphore_mem>>
      %69 = tpu.memref_squeeze %68 : memref<1x!tpu.dma_semaphore, #tpu.memory_space<semaphore_mem>> -> memref<!tpu.dma_semaphore, #tpu.memory_space<semaphore_mem>>
      tpu.enqueue_dma source(%66 : memref<1x128xf32, #tpu.memory_space<any>>) target(%67 : memref<1x128xf32, #tpu.memory_space<vmem>>) target_semaphore(%69 : memref<!tpu.dma_semaphore, #tpu.memory_space<semaphore_mem>>)
      %c7_i32 = arith.constant 7 : i32
      %70 = arith.addi %20, %c7_i32 : i32
      %71 = arith.index_cast %70 : i32 to index
      %72 = memref.load %arg3[%71] : memref<128xi32, #tpu.memory_space<smem>>
      %c7_i32_42 = arith.constant 7 : i32
      %c0_i32_43 = arith.constant 0 : i32
      %73 = tpu.memref_slice %arg4[%72, %c0_i32_43] : memref<128x128xf32, #tpu.memory_space<any>> -> memref<1x128xf32, #tpu.memory_space<any>>
      %c7_i32_44 = arith.constant 7 : i32
      %c0_i32_45 = arith.constant 0 : i32
      %74 = tpu.memref_slice %arg7[%c7_i32_44, %c0_i32_45] : memref<128x128xf32, #tpu.memory_space<vmem>> -> memref<1x128xf32, #tpu.memory_space<vmem>>
      %75 = tpu.memref_slice %arg8[%c7_i32_42] : memref<8x!tpu.dma_semaphore, #tpu.memory_space<semaphore_mem>> -> memref<1x!tpu.dma_semaphore, #tpu.memory_space<semaphore_mem>>
      %76 = tpu.memref_squeeze %75 : memref<1x!tpu.dma_semaphore, #tpu.memory_space<semaphore_mem>> -> memref<!tpu.dma_semaphore, #tpu.memory_space<semaphore_mem>>
      tpu.enqueue_dma source(%73 : memref<1x128xf32, #tpu.memory_space<any>>) target(%74 : memref<1x128xf32, #tpu.memory_space<vmem>>) target_semaphore(%76 : memref<!tpu.dma_semaphore, #tpu.memory_space<semaphore_mem>>)
      %c0_i32_46 = arith.constant 0 : i32
      %c128_i32_47 = arith.constant 128 : i32
      %77 = arith.addi %c0_i32_46, %c128_i32_47 : i32
      %c1_i32_48 = arith.constant 1 : i32
      scf.for %arg10 = %c0_i32_46 to %77 step %c1_i32_48  : i32 {
        %c8_i32 = arith.constant 8 : i32
        %c0_i32_50 = arith.constant 0 : i32
        %78 = arith.cmpi eq, %c8_i32, %c0_i32_50 : i32
        %c1_i32_51 = arith.constant 1 : i32
        %79 = arith.select %78, %c1_i32_51, %c8_i32 : i32
        %80 = arith.remsi %arg10, %79 : i32
        %c0_i32_52 = arith.constant 0 : i32
        %81 = arith.cmpi ne, %80, %c0_i32_52 : i32
        %c0_i32_53 = arith.constant 0 : i32
        %82 = arith.cmpi slt, %80, %c0_i32_53 : i32
        %c0_i32_54 = arith.constant 0 : i32
        %83 = arith.cmpi slt, %79, %c0_i32_54 : i32
        %84 = arith.xori %82, %83 : i1
        %85 = arith.andi %84, %81 : i1
        %86 = arith.addi %80, %79 : i32
        %87 = arith.select %85, %86, %80 : i32
        %c0_i32_55 = arith.constant 0 : i32
        %c0_i32_56 = arith.constant 0 : i32
        %88 = tpu.memref_slice %arg4[%c0_i32_55, %c0_i32_56] : memref<128x128xf32, #tpu.memory_space<any>> -> memref<1x128xf32, #tpu.memory_space<any>>
        %c0_i32_57 = arith.constant 0 : i32
        %89 = tpu.memref_slice %arg7[%arg10, %c0_i32_57] : memref<128x128xf32, #tpu.memory_space<vmem>> -> memref<1x128xf32, #tpu.memory_space<vmem>>
        %90 = tpu.memref_slice %arg8[%87] : memref<8x!tpu.dma_semaphore, #tpu.memory_space<semaphore_mem>> -> memref<1x!tpu.dma_semaphore, #tpu.memory_space<semaphore_mem>>
        %91 = tpu.memref_squeeze %90 : memref<1x!tpu.dma_semaphore, #tpu.memory_space<semaphore_mem>> -> memref<!tpu.dma_semaphore, #tpu.memory_space<semaphore_mem>>
        tpu.wait_dma2 semaphore(%91 : memref<!tpu.dma_semaphore, #tpu.memory_space<semaphore_mem>>) src(%88 : memref<1x128xf32, #tpu.memory_space<any>>) dst(%89 : memref<1x128xf32, #tpu.memory_space<vmem>>)
        %c8_i32_58 = arith.constant 8 : i32
        %92 = arith.addi %arg10, %c8_i32_58 : i32
        %c128_i32_59 = arith.constant 128 : i32
        %93 = arith.cmpi slt, %92, %c128_i32_59 : i32
        %94 = arith.extui %93 : i1 to i32
        %c0_i32_60 = arith.constant 0 : i32
        %95 = arith.cmpi ne, %94, %c0_i32_60 : i32
        scf.if %95 {
          %c8_i32_61 = arith.constant 8 : i32
          %96 = arith.addi %arg10, %c8_i32_61 : i32
          %97 = arith.addi %20, %96 : i32
          %98 = arith.index_cast %97 : i32 to index
          %99 = memref.load %arg3[%98] : memref<128xi32, #tpu.memory_space<smem>>
          %c8_i32_62 = arith.constant 8 : i32
          %c0_i32_63 = arith.constant 0 : i32
          %100 = arith.cmpi eq, %c8_i32_62, %c0_i32_63 : i32
          %c1_i32_64 = arith.constant 1 : i32
          %101 = arith.select %100, %c1_i32_64, %c8_i32_62 : i32
          %102 = arith.remsi %96, %101 : i32
          %c0_i32_65 = arith.constant 0 : i32
          %103 = arith.cmpi ne, %102, %c0_i32_65 : i32
          %c0_i32_66 = arith.constant 0 : i32
          %104 = arith.cmpi slt, %102, %c0_i32_66 : i32
          %c0_i32_67 = arith.constant 0 : i32
          %105 = arith.cmpi slt, %101, %c0_i32_67 : i32
          %106 = arith.xori %104, %105 : i1
          %107 = arith.andi %106, %103 : i1
          %108 = arith.addi %102, %101 : i32
          %109 = arith.select %107, %108, %102 : i32
          %c0_i32_68 = arith.constant 0 : i32
          %110 = tpu.memref_slice %arg4[%99, %c0_i32_68] : memref<128x128xf32, #tpu.memory_space<any>> -> memref<1x128xf32, #tpu.memory_space<any>>
          %c0_i32_69 = arith.constant 0 : i32
          %111 = tpu.memref_slice %arg7[%96, %c0_i32_69] : memref<128x128xf32, #tpu.memory_space<vmem>> -> memref<1x128xf32, #tpu.memory_space<vmem>>
          %112 = tpu.memref_slice %arg8[%109] : memref<8x!tpu.dma_semaphore, #tpu.memory_space<semaphore_mem>> -> memref<1x!tpu.dma_semaphore, #tpu.memory_space<semaphore_mem>>
          %113 = tpu.memref_squeeze %112 : memref<1x!tpu.dma_semaphore, #tpu.memory_space<semaphore_mem>> -> memref<!tpu.dma_semaphore, #tpu.memory_space<semaphore_mem>>
          tpu.enqueue_dma source(%110 : memref<1x128xf32, #tpu.memory_space<any>>) target(%111 : memref<1x128xf32, #tpu.memory_space<vmem>>) target_semaphore(%113 : memref<!tpu.dma_semaphore, #tpu.memory_space<semaphore_mem>>)
        } else {
        }
      }
      %c128_i32_49 = arith.constant 128 : i32
    } else {
    }
    %c0_i32_2 = arith.constant 0 : i32
    %5 = arith.cmpi eq, %arg2, %c0_i32_2 : i32
    %6 = arith.extui %5 : i1 to i32
    %c0_i32_3 = arith.constant 0 : i32
    %7 = arith.cmpi ne, %6, %c0_i32_3 : i32
    scf.if %7 {
      %cst_12 = arith.constant 0.000000e+00 : f32
      %20 = vector.broadcast %cst_12 : f32 to vector<128x128xf32>
      %c0_13 = arith.constant 0 : index
      %c0_14 = arith.constant 0 : index
      %21 = vector.load %arg9[%c0_13, %c0_14] : memref<128x128xf32, #tpu.memory_space<vmem>>, vector<128x128xf32>
      tpu.vector_store %arg9[%c0_13, %c0_14], %20 {strides = array<i32>} : memref<128x128xf32, #tpu.memory_space<vmem>>, vector<128x128xf32>,
    } else {
    }
    %c128_i32 = arith.constant 128 : i32
    %8 = arith.muli %arg2, %c128_i32 : i32
    %9 = tpu.assume_multiple %8, 128 : i32
    %c0 = arith.constant 0 : index
    %10 = arith.index_cast %9 : i32 to index
    %11 = vector.load %arg7[%c0, %10] : memref<128x128xf32, #tpu.memory_space<vmem>>, vector<128x128xf32>
    %c0_4 = arith.constant 0 : index
    %c0_5 = arith.constant 0 : index
    %12 = vector.load %arg9[%c0_4, %c0_5] : memref<128x128xf32, #tpu.memory_space<vmem>>, vector<128x128xf32>
    %c0_6 = arith.constant 0 : index
    %c0_7 = arith.constant 0 : index
    %13 = vector.load %arg5[%c0_6, %c0_7] : memref<128x128xf32, #tpu.memory_space<vmem>>, vector<128x128xf32>
    %cst = arith.constant dense<0.000000e+00> : vector<128x128xf32>
    %14 = tpu.matmul %11, %13, %cst {dimension_numbers = #tpu.dot_dimension_numbers<[1], [0], [0], [1], [0, 0, 1, 1], [], []>} : vector<128x128xf32>, vector<128x128xf32>, vector<128x128xf32> -> vector<128x128xf32>
    %15 = arith.addf %12, %14 : vector<128x128xf32>
    %c0_8 = arith.constant 0 : index
    %c0_9 = arith.constant 0 : index
    %16 = vector.load %arg9[%c0_8, %c0_9] : memref<128x128xf32, #tpu.memory_space<vmem>>, vector<128x128xf32>
    tpu.vector_store %arg9[%c0_8, %c0_9], %15 {strides = array<i32>} : memref<128x128xf32, #tpu.memory_space<vmem>>, vector<128x128xf32>,
    %c0_i32_10 = arith.constant 0 : i32
    %17 = arith.cmpi eq, %arg2, %c0_i32_10 : i32
    %18 = arith.extui %17 : i1 to i32
    %c0_i32_11 = arith.constant 0 : i32
    %19 = arith.cmpi ne, %18, %c0_i32_11 : i32
    scf.if %19 {
      %c0_12 = arith.constant 0 : index
      %c0_13 = arith.constant 0 : index
      %20 = vector.load %arg9[%c0_12, %c0_13] : memref<128x128xf32, #tpu.memory_space<vmem>>, vector<128x128xf32>
      %c0_14 = arith.constant 0 : index
      %c0_15 = arith.constant 0 : index
      %21 = vector.load %arg6[%c0_14, %c0_15] : memref<128x128xf32, #tpu.memory_space<vmem>>, vector<128x128xf32>
      tpu.vector_store %arg6[%c0_14, %c0_15], %20 {strides = array<i32>} : memref<128x128xf32, #tpu.memory_space<vmem>>, vector<128x128xf32>,
    } else {
    }
    return
  }
  func.func @transform_1(%arg0: i32, %arg1: i32, %arg2: i32, %arg3: memref<128xi32, #tpu.memory_space<smem>>) -> (i32, i32) {
    %c0_i32 = arith.constant 0 : i32
    return %arg2, %arg1 : i32, i32
  }
  func.func @transform_2(%arg0: i32, %arg1: i32, %arg2: i32, %arg3: memref<128xi32, #tpu.memory_space<smem>>) -> (i32, i32) {
    %c0_i32 = arith.constant 0 : i32
    return %arg0, %arg1 : i32, i32
  }
}

</mosaic_0001>

<bundles_post_ra>
// kernel: biglm_forward.1
= control target key start
LH: loop header
LB: loop body
LE: loop exit
PB: predicated region body
PF: predicated region fallthrough
CT: control target
= control target key end

     0   :  { %s1336_s0 = inlined_call_operand.hbm [shape: s32[128], index: 0, kind: input, shape index: {}]   ;;  %s1337_s1 = inlined_call_operand.hbm [shape: f32[128,128], index: 1, kind: input, shape index: {}]   ;;  %s1338_s2 = inlined_call_operand.hbm [shape: f32[128,128], index: 2, kind: input, shape index: {}]   ;;  %s1339_s3 = inlined_call_operand.hbm [shape: f32[128,128], index: 3, kind: output, shape index: {}]  }
   0x1   :  { %s801_s14 = scalar_lea.hbm %s1336_s0, 16 }
   0x2   :  { %p802_p0 = scmp.ne.s32.totalorder %s1336_s0, %s801_s14  ;;  %p805_p1 = scmp.lt.u32.totalorder %s801_s14, %s1336_s0 }
   0x4   :  { %p807_p2 = pnand %p805_p1, %p802_p0 }
   0x6   :  { %810 = shalt.err (!%p807_p2)  }
   0x7   :  { %s1091_s19 = smov [#allocation6]  }
   0x8   :  { %9 = dma.hbm_to_smem %s1336_s0, 16, %s1091_s19, [#allocation5] }
   0x9   :  { %1079 = dma.done.wait [#allocation5], 16 }
   0xa   :  { %1080 = vsyncadd [#allocation5], 4294967280 }
   0xb   :  { %11 = sfence }
   0xc   :  { %12 = vsyncpa [#allocation8], 0 }
   0xd   :  { %13 = vsyncpa [#allocation9], 0  ;;  %s1092_s22 = smov [#allocation7]   ;;  %s811_s26 = scalar_lea.hbm %s1338_s2, 2048 }
   0xe   :  { %s19_s23 = sshll.u32 %s1092_s22, 4  ;;  %p812_p3 = scmp.ne.s32.totalorder %s1338_s2, %s811_s26  ;;  %s20_s23 = int_to_ptr.vmem [resolvable:$true] %s19_s23 }
   0xf   :  { %p815_p4 = scmp.lt.u32.totalorder %s811_s26, %s1338_s2 }
  0x11   :  { %p817_p5 = pnand %p815_p4, %p812_p3 }
  0x13   :  { %820 = shalt.err (!%p817_p5)
}
  0x14   :  { %s821_s0 = scalar_lea.vmem %s20_s23, 2048  ;;  %p826_p7 = scmp.lt.s32.totalorder %s20_s23, %s20_s23 }
  0x15   :  { %p822_p6 = scmp.ne.s32.totalorder %s20_s23, %s821_s0  ;;  %p827_p8 = scmp.lt.s32.totalorder %s821_s0, %s821_s0 }
  0x17   :  { %p828_p9 = por %p827_p8, %p826_p7 }
  0x19   :  { %p829_p10 = pnand %p828_p9, %p822_p6 }
  0x1b   :  { %832 = shalt.err (!%p829_p10)
}
  0x1c   :  { %s1093_s4 = smov 128   ;;  %s1094_s5 = smov 8  }
  0x1d   :  { %25 = dma.hbm_to_vmem [thread:$0]  %s1338_s2, 2048, %s20_s23, [#allocation8], %s1093_s4, %s1093_s4, %s1094_s5  }
  0x1e   :  { %1081 = dma.done.wait [#allocation8], 2048  }
  0x1f   :  { %1082 = vsyncadd [#allocation8], 4294965248  ;;  %s36_s8 = sld [smem:[#allocation6]]  ;;  %s1095_s9 = smov [#allocation2]  }
  0x20   :  { %s46_s10 = sshll.u32 %s1095_s9, 4  ;;  %s1153_s11 = sld [smem:[#allocation6 + $0x1]]  ;;  %s1151_s10 = int_to_ptr.vmem [resolvable:$true] %s46_s10 }
  0x21   :  { %s1096_s12 = smov [#allocation2 + $0x1]   ;;  %s1155_s14 = sld [smem:[#allocation6 + $0x2]] }
  0x22   :  { %s63_s13 = sshll.u32 %s1096_s12, 4  ;;  %s1097_s15 = smov [#allocation2 + $0x2]   ;;  %s1157_s13 = int_to_ptr.vmem [resolvable:$true] %s63_s13 }
  0x23   :  { %s80_s16 = sshll.u32 %s1097_s15, 4  ;;  %s1159_s17 = sld [smem:[#allocation6 + $0x3]]  ;;  %s1161_s16 = int_to_ptr.vmem [resolvable:$true] %s80_s16 }
  0x24   :  { %s1098_s18 = smov [#allocation2 + $0x3]   ;;  %s1172_s27 = scalar_lea.hbm %s1337_s1, 2048 }
  0x25   :  { %s608_s2 = sshll.u32 %s36_s8, 4  ;;  %s1163_s19 = sshll.u32 %s1098_s18, 4  ;;  %s98_s19 = int_to_ptr.vmem [resolvable:$true] %s1163_s19 }
  0x26   :  { %s38_s22 = scalar_lea.hbm %s1337_s1, %s608_s2  ;;  %s610_s23 = sshll.u32 %s1153_s11, 4 }
  0x27   :  { %s833_s24 = scalar_lea.hbm %s38_s22, 16  ;;  %p836_p12 = scmp.lt.u32.totalorder %s38_s22, %s1337_s1 }
  0x28   :  { %p834_p11 = scmp.ne.s32.totalorder %s38_s22, %s833_s24  ;;  %p837_p13 = scmp.lt.u32.totalorder %s1172_s27, %s833_s24 }
  0x29   :  { %p839_p1 = scmp.lt.u32.totalorder %s833_s24, %s38_s22 }
  0x2a   :  { %p838_p0 = por %p837_p13, %p836_p12 }
  0x2c   :  { %p840_p2 = por %p839_p1, %p838_p0 }
  0x2e   :  { %p841_p3 = pnand %p840_p2, %p834_p11 }
  0x30   :  { %844 = shalt.err (!%p841_p3)  }
  0x31   :  { %s845_s30 = scalar_lea.vmem %s1151_s10, 16  ;;  %s1181_s0 = scalar_lea.vmem %s1151_s10, 2048 }
  0x32   :  { %p846_p4 = scmp.ne.s32.totalorder %s1151_s10, %s845_s30  ;;  %p850_p5 = scmp.lt.s32.totalorder %s1151_s10, %s1151_s10 }
  0x33   :  { %p851_p6 = scmp.lt.s32.totalorder %s1181_s0, %s845_s30 }
  0x35   :  { %p852_p7 = por %p851_p6, %p850_p5 }
  0x37   :  { %p853_p8 = pnand %p852_p7, %p846_p4 }
  0x39   :  { %856 = shalt.err (!%p853_p8)  }
  0x3a   :  { %49 = dma.hbm_to_vmem [thread:$0]  %s38_s22, 16, %s1151_s10, [#allocation3] }
  0x3b   :  { %s53_s8 = scalar_lea.hbm %s1337_s1, %s610_s23  ;;  %s612_s9 = sshll.u32 %s1155_s14, 4 }
  0x3c   :  { %s857_s11 = scalar_lea.hbm %s53_s8, 16  ;;  %p860_p10 = scmp.lt.u32.totalorder %s53_s8, %s1337_s1 }
  0x3d   :  { %p858_p9 = scmp.ne.s32.totalorder %s53_s8, %s857_s11  ;;  %p861_p11 = scmp.lt.u32.totalorder %s1172_s27, %s857_s11 }
  0x3e   :  { %p863_p13 = scmp.lt.u32.totalorder %s857_s11, %s53_s8 }
  0x3f   :  { %p862_p12 = por %p861_p11, %p860_p10 }
  0x41   :  { %p864_p0 = por %p863_p13, %p862_p12 }
  0x43   :  { %p865_p1 = pnand %p864_p0, %p858_p9 }
  0x45   :  { %868 = shalt.err (!%p865_p1)  }
  0x46   :  { %s869_s2 = scalar_lea.vmem %s1157_s13, 16  ;;  %p874_p3 = scmp.lt.s32.totalorder %s1157_s13, %s1151_s10 }
  0x47   :  { %p870_p2 = scmp.ne.s32.totalorder %s1157_s13, %s869_s2  ;;  %p875_p4 = scmp.lt.s32.totalorder %s1181_s0, %s869_s2 }
  0x49   :  { %p876_p5 = por %p875_p4, %p874_p3 }
  0x4b   :  { %p877_p6 = pnand %p876_p5, %p870_p2 }
  0x4d   :  { %880 = shalt.err (!%p877_p6)  }
  0x4e   :  { %66 = dma.hbm_to_vmem [thread:$0]  %s53_s8, 16, %s1157_s13, [#allocation3 + $0x1] }
  0x4f   :  { %s70_s20 = scalar_lea.hbm %s1337_s1, %s612_s9  ;;  %s614_s21 = sshll.u32 %s1159_s17, 4 }
  0x50   :  { %s881_s22 = scalar_lea.hbm %s70_s20, 16  ;;  %p884_p8 = scmp.lt.u32.totalorder %s70_s20, %s1337_s1 }
  0x51   :  { %p882_p7 = scmp.ne.s32.totalorder %s70_s20, %s881_s22  ;;  %p885_p9 = scmp.lt.u32.totalorder %s1172_s27, %s881_s22 }
  0x52   :  { %p887_p11 = scmp.lt.u32.totalorder %s881_s22, %s70_s20 }
  0x53   :  { %p886_p10 = por %p885_p9, %p884_p8 }
  0x55   :  { %p888_p12 = por %p887_p11, %p886_p10 }
  0x57   :  { %p889_p13 = pnand %p888_p12, %p882_p7 }
  0x59   :  { %892 = shalt.err (!%p889_p13)  }
  0x5a   :  { %s893_s13 = scalar_lea.vmem %s1161_s16, 16  ;;  %p898_p1 = scmp.lt.s32.totalorder %s1161_s16, %s1151_s10 }
  0x5b   :  { %p894_p0 = scmp.ne.s32.totalorder %s1161_s16, %s893_s13  ;;  %p899_p2 = scmp.lt.s32.totalorder %s1181_s0, %s893_s13 }
  0x5d   :  { %p900_p3 = por %p899_p2, %p898_p1 }
  0x5f   :  { %p901_p4 = pnand %p900_p3, %p894_p0 }
  0x61   :  { %904 = shalt.err (!%p901_p4)  }
  0x62   :  { %83 = dma.hbm_to_vmem [thread:$0]  %s70_s20, 16, %s1161_s16, [#allocation3 + $0x2] }
  0x63   :  { %s87_s26 = scalar_lea.hbm %s1337_s1, %s614_s21 }
  0x64   :  { %s905_s28 = scalar_lea.hbm %s87_s26, 16  ;;  %p908_p6 = scmp.lt.u32.totalorder %s87_s26, %s1337_s1 }
  0x65   :  { %p906_p5 = scmp.ne.s32.totalorder %s87_s26, %s905_s28  ;;  %p909_p7 = scmp.lt.u32.totalorder %s1172_s27, %s905_s28 }
  0x66   :  { %p911_p9 = scmp.lt.u32.totalorder %s905_s28, %s87_s26 }
  0x67   :  { %p910_p8 = por %p909_p7, %p908_p6 }
  0x69   :  { %p912_p10 = por %p911_p9, %p910_p8 }
  0x6b   :  { %p913_p11 = pnand %p912_p10, %p906_p5 }
  0x6d   :  { %916 = shalt.err (!%p913_p11)  }
  0x6e   :  { %s917_s6 = scalar_lea.vmem %s98_s19, 16  ;;  %p922_p13 = scmp.lt.s32.totalorder %s98_s19, %s1151_s10 }
  0x6f   :  { %p918_p12 = scmp.ne.s32.totalorder %s98_s19, %s917_s6  ;;  %p923_p0 = scmp.lt.s32.totalorder %s1181_s0, %s917_s6 }
  0x71   :  { %p924_p1 = por %p923_p0, %p922_p13 }
  0x73   :  { %p925_p2 = pnand %p924_p1, %p918_p12 }
  0x75   :  { %928 = shalt.err (!%p925_p2)  }
  0x76   :  { %100 = dma.hbm_to_vmem [thread:$0]  %s87_s26, 16, %s98_s19, [#allocation3 + $0x3] }
  0x77   :  { %s615_s16 = sld [smem:[#allocation6 + $0x4]]  ;;  %s1099_s7 = smov [#allocation2 + $0x4]  }
  0x78   :  { %s114_s8 = sshll.u32 %s1099_s7, 4  ;;  %s1225_s9 = sld [smem:[#allocation6 + $0x5]]  ;;  %s115_s8 = int_to_ptr.vmem [resolvable:$true] %s114_s8 }
  0x79   :  { %s1100_s11 = smov [#allocation2 + $0x5]   ;;  %s1227_s15 = sld [smem:[#allocation6 + $0x6]] }
  0x7a   :  { %s131_s12 = sshll.u32 %s1100_s11, 4  ;;  %s1101_s2 = smov [#allocation2 + $0x6]   ;;  %s1229_s12 = int_to_ptr.vmem [resolvable:$true] %s131_s12 }
  0x7b   :  { %s148_s14 = sshll.u32 %s1101_s2, 4  ;;  %s1231_s18 = sld [smem:[#allocation6 + $0x7]]  ;;  %s1233_s14 = int_to_ptr.vmem [resolvable:$true] %s148_s14 }
  0x7d   :  { %s616_s20 = sshll.u32 %s615_s16, 4 }
  0x7e   :  { %s104_s22 = scalar_lea.hbm %s1337_s1, %s616_s20  ;;  %s618_s23 = sshll.u32 %s1225_s9, 4 }
  0x7f   :  { %s929_s24 = scalar_lea.hbm %s104_s22, 16  ;;  %p932_p4 = scmp.lt.u32.totalorder %s104_s22, %s1337_s1 }
  0x80   :  { %p930_p3 = scmp.ne.s32.totalorder %s104_s22, %s929_s24  ;;  %p933_p5 = scmp.lt.u32.totalorder %s1172_s27, %s929_s24 }
  0x81   :  { %p935_p7 = scmp.lt.u32.totalorder %s929_s24, %s104_s22 }
  0x82   :  { %p934_p6 = por %p933_p5, %p932_p4 }
  0x84   :  { %p936_p8 = por %p935_p7, %p934_p6 }
  0x86   :  { %p937_p9 = pnand %p936_p8, %p930_p3 }
  0x88   :  { %940 = shalt.err (!%p937_p9)  }
  0x89   :  { %s941_s25 = scalar_lea.vmem %s115_s8, 16  ;;  %p946_p11 = scmp.lt.s32.totalorder %s115_s8, %s1151_s10 }
  0x8a   :  { %p942_p10 = scmp.ne.s32.totalorder %s115_s8, %s941_s25  ;;  %p947_p12 = scmp.lt.s32.totalorder %s1181_s0, %s941_s25 }
  0x8c   :  { %p948_p13 = por %p947_p12, %p946_p11 }
  0x8e   :  { %p949_p0 = pnand %p948_p13, %p942_p10 }
  0x90   :  { %952 = shalt.err (!%p949_p0)  }
  0x91   :  { %117 = dma.hbm_to_vmem [thread:$0]  %s104_s22, 16, %s115_s8, [#allocation3 + $0x4] }
  0x92   :  { %s121_s29 = scalar_lea.hbm %s1337_s1, %s618_s23  ;;  %s620_s30 = sshll.u32 %s1227_s15, 4 }
  0x93   :  { %s953_s6 = scalar_lea.hbm %s121_s29, 16  ;;  %p956_p2 = scmp.lt.u32.totalorder %s121_s29, %s1337_s1 }
  0x94   :  { %p954_p1 = scmp.ne.s32.totalorder %s121_s29, %s953_s6  ;;  %p957_p3 = scmp.lt.u32.totalorder %s1172_s27, %s953_s6 }
  0x95   :  { %p959_p5 = scmp.lt.u32.totalorder %s953_s6, %s121_s29 }
  0x96   :  { %p958_p4 = por %p957_p3, %p956_p2 }
  0x98   :  { %p960_p6 = por %p959_p5, %p958_p4 }
  0x9a   :  { %p961_p7 = pnand %p960_p6, %p954_p1 }
  0x9c   :  { %964 = shalt.err (!%p961_p7)  }
  0x9d   :  { %s965_s8 = scalar_lea.vmem %s1229_s12, 16  ;;  %p970_p9 = scmp.lt.s32.totalorder %s1229_s12, %s1151_s10 }
  0x9e   :  { %p966_p8 = scmp.ne.s32.totalorder %s1229_s12, %s965_s8  ;;  %p971_p10 = scmp.lt.s32.totalorder %s1181_s0, %s965_s8 }
  0xa0   :  { %p972_p11 = por %p971_p10, %p970_p9 }
  0xa2   :  { %p973_p12 = pnand %p972_p11, %p966_p8 }
  0xa4   :  { %976 = shalt.err (!%p973_p12)  }
  0xa5   :  { %134 = dma.hbm_to_vmem [thread:$0]  %s121_s29, 16, %s1229_s12, [#allocation3 + $0x5] }
  0xa6   :  { %s138_s15 = scalar_lea.hbm %s1337_s1, %s620_s30  ;;  %s622_s2 = sshll.u32 %s1231_s18, 4 }
  0xa7   :  { %s977_s20 = scalar_lea.hbm %s138_s15, 16  ;;  %p980_p0 = scmp.lt.u32.totalorder %s138_s15, %s1337_s1 }
  0xa8   :  { %p978_p13 = scmp.ne.s32.totalorder %s138_s15, %s977_s20  ;;  %p981_p1 = scmp.lt.u32.totalorder %s1172_s27, %s977_s20 }
  0xa9   :  { %p983_p3 = scmp.lt.u32.totalorder %s977_s20, %s138_s15 }
  0xaa   :  { %p982_p2 = por %p981_p1, %p980_p0 }
  0xac   :  { %p984_p4 = por %p983_p3, %p982_p2 }
  0xae   :  { %p985_p5 = pnand %p984_p4, %p978_p13 }
  0xb0   :  { %988 = shalt.err (!%p985_p5)  }
  0xb1   :  { %s989_s12 = scalar_lea.vmem %s1233_s14, 16  ;;  %p994_p7 = scmp.lt.s32.totalorder %s1233_s14, %s1151_s10 }
  0xb2   :  { %p990_p6 = scmp.ne.s32.totalorder %s1233_s14, %s989_s12  ;;  %p995_p8 = scmp.lt.s32.totalorder %s1181_s0, %s989_s12 }
  0xb4   :  { %p996_p9 = por %p995_p8, %p994_p7 }
  0xb6   :  { %p997_p10 = pnand %p996_p9, %p990_p6 }
  0xb8   :  { %1000 = shalt.err (!%p997_p10)  }
  0xb9   :  { %151 = dma.hbm_to_vmem [thread:$0]  %s138_s15, 16, %s1233_s14, [#allocation3 + $0x6] }
  0xba   :  { %s155_s23 = scalar_lea.hbm %s1337_s1, %s622_s2  ;;  %s1102_s24 = smov [#allocation2 + $0x7]  }
  0xbb   :  { %s165_s13 = sshll.u32 %s1102_s24, 4  ;;  %s1001_s17 = scalar_lea.hbm %s155_s23, 16  ;;  %s166_s13 = int_to_ptr.vmem [resolvable:$true] %s165_s13 }
  0xbc   :  { %p1002_p11 = scmp.ne.s32.totalorder %s155_s23, %s1001_s17  ;;  %p1004_p12 = scmp.lt.u32.totalorder %s155_s23, %s1337_s1 }
  0xbd   :  { %p1005_p13 = scmp.lt.u32.totalorder %s1172_s27, %s1001_s17  ;;  %p1007_p1 = scmp.lt.u32.totalorder %s1001_s17, %s155_s23 }
  0xbf   :  { %p1006_p0 = por %p1005_p13, %p1004_p12 }
  0xc1   :  { %p1008_p2 = por %p1007_p1, %p1006_p0 }
  0xc3   :  { %p1009_p3 = pnand %p1008_p2, %p1002_p11 }
  0xc5   :  { %1012 = shalt.err (!%p1009_p3)  }
  0xc6   :  { %s1013_s14 = scalar_lea.vmem %s166_s13, 16  ;;  %p1018_p5 = scmp.lt.s32.totalorder %s166_s13, %s1151_s10 }
  0xc7   :  { %p1014_p4 = scmp.ne.s32.totalorder %s166_s13, %s1013_s14  ;;  %p1019_p6 = scmp.lt.s32.totalorder %s1181_s0, %s1013_s14 }
  0xc9   :  { %p1020_p7 = por %p1019_p6, %p1018_p5 }
  0xcb   :  { %p1021_p8 = pnand %p1020_p7, %p1014_p4 }
  0xcd   :  { %1024 = shalt.err (!%p1021_p8)  }
  0xce   :  { %168 = dma.hbm_to_vmem [thread:$0]  %s155_s23, 16, %s166_s13, [#allocation3 + $0x7] }
  0xcf   :  { %s1282_s28 = smov 0  }
  0xd0 LB: > { %p175_p9 = scmp.lt.s32.totalorder %s1089_s28, 0  ;;  %s176_s29 = ssub.s32 0, %s1089_s28  ;;  %s1089_s28 = sphi %s1282_s28, %s174_s28  }
  0xd1   : > { %s623_s30 = smin.u32 %s1089_s28, %s176_s29 }
  0xd2   : > { %s178_s6 = sand.u32 7, %s623_s30  }
  0xd3   : > { %s179_s16 = ssub.s32 0, %s178_s6 }
  0xd4   : > { %s1341_s16 = smov (!%p175_p9, %s179_s16), %s178_s6 }
  0xd5   : > { %p625_p10 = scmp.lt.s32.totalorder %s1341_s16, 0  ;;  %s185_s7 = sadd.s32 8, %s1341_s16 }
  0xd7   : > { %s1343_s7 = smov (!%p625_p10, %s185_s7), %s1341_s16 }
  0xd8   : > { %s187_s8 = scalar_lea.sflag [#allocation3], %s1343_s7 }
  0xd9   : > { %1083 = dma.done.wait %s187_s8, 16 }
  0xda   : > { %1084 = vsyncadd %s187_s8, 4294967280  ;;  %s1291_s9 = sadd.s32 8, %s1089_s28  ;;  %s599_s18 = scalar_lea.vmem [#allocation2], %s1089_s28 }
  0xdb   : > { %p779_p11 = scmp.lt.s32.totalorder %s1291_s9, 128  ;;  %p198_p12 = scmp.lt.s32.totalorder %s1291_s9, 0 }
  0xdc   : > { %s199_s11 = ssub.s32 0, %s1291_s9  ;;  %s600_s22 = scalar_lea.vmem %s599_s18, 8 [#allocation2] }
  0xdd   : > { %s776_s15 = scalar_select %p779_p11, [#allocation6], [#allocation31] }
  0xde   : > { %s777_s2 = scalar_select %p779_p11, %s1291_s9, 0 }
  0xdf   : > { %s627_s20 = smin.u32 %s199_s11, %s1291_s9  ;;  %s221_s23 = sshll.u32 %s600_s22, 4  ;;  %s222_s23 = int_to_ptr.vmem [resolvable:$true] %s221_s23 }
  0xe0   : > { %s197_s19 = sld [smem:[%s776_s15 + %s777_s2]]  ;;  %s201_s21 = sand.u32 7, %s627_s20  }
  0xe1   : > { %s202_s12 = ssub.s32 0, %s201_s21 }
  0xe2   : > { %s1345_s12 = smov (!%p198_p12, %s202_s12), %s201_s21 }
  0xe3   : > { %p629_p13 = scmp.lt.s32.totalorder %s1345_s12, 0  ;;  %s208_s24 = sadd.s32 8, %s1345_s12 }
  0xe5   : > { %s1347_s24 = smov (!%p629_p13, %s208_s24), %s1345_s12 }
  0xe6   : > { %s630_s13 = sshll.u32 %s197_s19, 4  ;;  %s213_s14 = scalar_lea.sflag [#allocation3], %s1347_s24 }
  0xe7   : > { %s211_s26 = scalar_lea.hbm %s1337_s1, %s630_s13 }
  0xe8   : > { %s1025_s29 = scalar_lea.hbm %s211_s26, 16  ;;  %p1030_p3 = scmp.lt.u32.totalorder %s211_s26, %s1337_s1 }
  0xe9   : > { %p1026_p0 = scmp.ne.s32.totalorder %s211_s26, %s1025_s29  ;;  %p1031_p4 = scmp.lt.u32.totalorder %s1172_s27, %s1025_s29 }
  0xea   : > { %p1033_p6 = scmp.lt.u32.totalorder %s1025_s29, %s211_s26 }
  0xeb   : > { %p1027_p1 = pnand %p1026_p0, %p779_p11  ;;  %p1032_p5 = por %p1031_p4, %p1030_p3 }
  0xed   : > { %p1028_p2 = pneg %p1027_p1  ;;  %p1034_p7 = por %p1033_p6, %p1032_p5 }
  0xef   : > { %p1035_p8 = pnand %p1034_p7, %p1028_p2 }
  0xf1   : > { %1038 = shalt.err (!%p1035_p8)  }
  0xf2   : > { %s1039_s16 = scalar_lea.vmem %s222_s23, 16  ;;  %p1046_p13 = scmp.lt.s32.totalorder %s222_s23, %s1151_s10 }
  0xf3   : > { %p1040_p9 = scmp.ne.s32.totalorder %s222_s23, %s1039_s16  ;;  %p1047_p0 = scmp.lt.s32.totalorder %s1181_s0, %s1039_s16 }
  0xf5   : > { %p1041_p10 = pnand %p1040_p9, %p779_p11  ;;  %p1048_p1 = por %p1047_p0, %p1046_p13 }
  0xf7   : > { %p1042_p12 = pneg %p1041_p10 }
  0xf9   : > { %p1049_p3 = pnand %p1048_p1, %p1042_p12 }
  0xfb   : > { %1052 = shalt.err (!%p1049_p3)  }
  0xfc   : > { %778 = dma.hbm_to_vmem [thread:$0]  (%p779_p11), %s211_s26, 16, %s222_s23, %s213_s14 }
  0xfd   : > { %s174_s28 = sadd.s32 1, %s1089_s28  }
  0xfe   : > { %p171_p2 = scmp.ge.s32.totalorder %s174_s28, 128  }
  0xff   :  { %v280_v0 = vld [vmem:[#allocation7] sm:$0xff] (%p171_p2)  ;;  %v281_v1 = vld [vmem:[#allocation7 + $0x8] sm:$0xff] (%p171_p2)  ;;  %v282_v2 = vld [vmem:[#allocation7 + $0x10] sm:$0xff] (%p171_p2)  ;;  %s1103_s1 = smov (%p171_p2), [#allocation10]  }
 0x100   :  { %173 = sbr.rel (!%p171_p2) target bundleno = 208 (0xd0), region = 121  ;;  %v727_v3 = vpack.c.bf16 (%p171_p2), %v281_v1, %v280_v0  ;;  %v283_v4 = vld [vmem:[#allocation7 + $0x18] sm:$0xff] (%p171_p2)  ;;  %v284_v6 = vld [vmem:[#allocation7 + $0x20] sm:$0xff] (%p171_p2)  ;;  %v285_v7 = vld [vmem:[#allocation7 + $0x28] sm:$0xff] (%p171_p2)  ;;  %s513_s10 = sshll.u32 (%p171_p2), %s1103_s1, 4  ;;  %s514_s10 = int_to_ptr.vmem [resolvable:$true] %s513_s10 }
 0x101   :  { %v731_v5 = vpack.c.bf16 (%p171_p2), %v283_v4, %v282_v2  ;;  %v735_v8 = vpack.c.bf16 (%p171_p2), %v285_v7, %v284_v6  ;;  %v248_v9 = vld [vmem:[#allocation2] sm:$0xff] (%p171_p2)  ;;  %v286_v11 = vld [vmem:[#allocation7 + $0x30] sm:$0xff] (%p171_p2)  ;;  %v287_v12 = vld [vmem:[#allocation7 + $0x38] sm:$0xff] (%p171_p2)  ;;  %s1053_s27 = scalar_lea.vmem (%p171_p2), %s514_s10, 2048  ;;  %p1058_p4 = scmp.lt.s32.totalorder (%p171_p2), %s514_s10, %s514_s10 }
 0x102   :  { %728 = vmatprep.subr.bf16.mxu0 (%p171_p2), %v727_v3  ;;  %759 = vmatprep.subr.bf16.mxu1 (%p171_p2), %v727_v3  ;;  %v256_v10 = vld [vmem:[#allocation2 + $0x40] sm:$0xff] (%p171_p2)  ;;  %v739_v13 = vpack.c.bf16 (%p171_p2), %v287_v12, %v286_v11  ;;  %v289_v15 = vld [vmem:[#allocation7 + $0x48] sm:$0xff] (%p171_p2)  ;;  %v290_v17 = vld [vmem:[#allocation7 + $0x50] sm:$0xff] (%p171_p2)  ;;  %p1054_p11 = scmp.ne.s32.totalorder (%p171_p2), %s514_s10, %s1053_s27  ;;  %p1059_p5 = scmp.lt.s32.totalorder (%p171_p2), %s1053_s27, %s1053_s27 }
 0x103   :  { %730 = vmatpush3.bf16.msra.mxu0 (%p171_p2), %v727_v3  ;;  %767 = vmatpush3.bf16.msra.mxu1 (%p171_p2), %v727_v3  ;;  %v288_v14 = vld [vmem:[#allocation7 + $0x40] sm:$0xff] (%p171_p2)  ;;  %v291_v18 = vld [vmem:[#allocation7 + $0x58] sm:$0xff] (%p171_p2)  ;;  %v293_v21 = vld [vmem:[#allocation7 + $0x68] sm:$0xff] (%p171_p2) }
 0x104   :  { %732 = vmatprep.subr.bf16.mxu0 (%p171_p2), %v731_v5  ;;  %760 = vmatprep.subr.bf16.mxu1 (%p171_p2), %v731_v5  ;;  %v743_v16 = vpack.c.bf16 (%p171_p2), %v289_v15, %v288_v14  ;;  %v747_v19 = vpack.c.bf16 (%p171_p2), %v291_v18, %v290_v17  ;;  %v292_v20 = vld [vmem:[#allocation7 + $0x60] sm:$0xff] (%p171_p2)  ;;  %v294_v23 = vld [vmem:[#allocation7 + $0x70] sm:$0xff] (%p171_p2)  ;;  %v295_v24 = vld [vmem:[#allocation7 + $0x78] sm:$0xff] (%p171_p2)  ;;  %p1060_p6 = por (%p171_p2), %p1059_p5, %p1058_p4 }
 0x105   :  { %703 = vmatprep.mubr.f32.mxu0 (%p171_p2), %v248_v9  ;;  %715 = vmatprep.mubr.f32.mxu1 (%p171_p2), %v256_v10  ;;  %v751_v22 = vpack.c.bf16 (%p171_p2), %v293_v21, %v292_v20  ;;  %v755_v25 = vpack.c.bf16 (%p171_p2), %v295_v24, %v294_v23  ;;  %v249_v26 = vld [vmem:[#allocation2 + $0x8] sm:$0xff] (%p171_p2)  ;;  %v250_v28 = vld [vmem:[#allocation2 + $0x10] sm:$0xff] (%p171_p2)  ;;  %v251_v30 = vld [vmem:[#allocation2 + $0x18] sm:$0xff] (%p171_p2) }
 0x106   :  { %v257_v27 = vld [vmem:[#allocation2 + $0x48] sm:$0xff] (%p171_p2)  ;;  %v258_v29 = vld [vmem:[#allocation2 + $0x50] sm:$0xff] (%p171_p2)  ;;  %v259_v31 = vld [vmem:[#allocation2 + $0x58] sm:$0xff] (%p171_p2)  ;;  %p1061_p7 = pnand (%p171_p2), %p1060_p6, %p1054_p11 }
 0x107   :  { %734 = vmatpush3.bf16.msra.mxu0 %v731_v5  ;;  %768 = vmatpush3.bf16.msra.mxu1 %v731_v5  ;;  %v252_v32 = vld [vmem:[#allocation2 + $0x20] sm:$0xff]  ;;  %v253_v34 = vld [vmem:[#allocation2 + $0x28] sm:$0xff]  ;;  %v254_v36 = vld [vmem:[#allocation2 + $0x30] sm:$0xff] }
 0x108   :  { %736 = vmatprep.subr.bf16.mxu0 %v735_v8  ;;  %761 = vmatprep.subr.bf16.mxu1 %v735_v8  ;;  %v260_v33 = vld [vmem:[#allocation2 + $0x60] sm:$0xff]  ;;  %v261_v35 = vld [vmem:[#allocation2 + $0x68] sm:$0xff]  ;;  %v262_v37 = vld [vmem:[#allocation2 + $0x70] sm:$0xff] }
 0x109   :  { %v255_v38 = vld [vmem:[#allocation2 + $0x38] sm:$0xff] }
 0x10a   :  { %v263_v39 = vld [vmem:[#allocation2 + $0x78] sm:$0xff] }
 0x10b   :  { %738 = vmatpush3.bf16.msra.mxu0 %v735_v8  ;;  %769 = vmatpush3.bf16.msra.mxu1 %v735_v8 }
 0x10c   :  { %740 = vmatprep.subr.bf16.mxu0 %v739_v13  ;;  %762 = vmatprep.subr.bf16.mxu1 %v739_v13 }
 0x10f   :  { %742 = vmatpush3.bf16.msra.mxu0 %v739_v13  ;;  %770 = vmatpush3.bf16.msra.mxu1 %v739_v13 }
 0x110   :  { %744 = vmatprep.subr.bf16.mxu0 %v743_v16  ;;  %763 = vmatprep.subr.bf16.mxu1 %v743_v16 }
 0x113   :  { %746 = vmatpush3.bf16.msra.mxu0 %v743_v16  ;;  %771 = vmatpush3.bf16.msra.mxu1 %v743_v16 }
 0x114   :  { %748 = vmatprep.subr.bf16.mxu0 %v747_v19  ;;  %764 = vmatprep.subr.bf16.mxu1 %v747_v19 }
 0x117   :  { %750 = vmatpush3.bf16.msra.mxu0 %v747_v19  ;;  %772 = vmatpush3.bf16.msra.mxu1 %v747_v19 }
 0x118   :  { %752 = vmatprep.subr.bf16.mxu0 %v751_v22  ;;  %765 = vmatprep.subr.bf16.mxu1 %v751_v22 }
 0x11b   :  { %754 = vmatpush3.bf16.msra.mxu0 %v751_v22  ;;  %773 = vmatpush3.bf16.msra.mxu1 %v751_v22 }
 0x11c   :  { %756 = vmatprep.subr.bf16.mxu0 %v755_v25  ;;  %766 = vmatprep.subr.bf16.mxu1 %v755_v25 }
 0x11f   :  { %758 = vmatpush3.bf16.msra.mxu0 %v755_v25  ;;  %774 = vmatpush3.bf16.msra.mxu1 %v755_v25 }
 0x122   :  { %704 = vmatmul.mubr.f32.vlgmr.msra.gmra.mrb[0].mxu0 %v249_v26  ;;  %716 = vmatmul.mubr.f32.vlgmr.msra.gmra.mrb[0].mxu1 %v257_v27 }
 0x123   :  { %706 = vmatprep.mubr.f32.mxu0 %v250_v28  ;;  %718 = vmatprep.mubr.f32.mxu1 %v258_v29 }
 0x126   :  { %707 = vmatmul.mubr.f32.gmra.mrb[2].mxu0 %v251_v30  ;;  %719 = vmatmul.mubr.f32.gmra.mrb[2].mxu1 %v259_v31 }
 0x127   :  { %709 = vmatprep.mubr.f32.mxu0 %v252_v32  ;;  %721 = vmatprep.mubr.f32.mxu1 %v260_v33 }
 0x12a   :  { %710 = vmatmul.mubr.f32.gmra.mrb[4].mxu0 %v253_v34  ;;  %722 = vmatmul.mubr.f32.gmra.mrb[4].mxu1 %v261_v35 }
 0x12b   :  { %712 = vmatprep.mubr.f32.mxu0 %v254_v36  ;;  %724 = vmatprep.mubr.f32.mxu1 %v262_v37 }
 0x12e   :  { %713 = vmatmul.mubr.f32.gmra.mrb[6].mxu0 %v255_v38  ;;  %725 = vmatmul.mubr.f32.gmra.mrb[6].mxu1 %v263_v39 }
 0x1f5   :  { %v705_v40 = vpop.f32.mrb[0].mxu0  ;;  %v717_v41 = vpop.f32.mrb[0].mxu1 }
 0x1f6   :  { %493 = vst [vmem:[#allocation10 + $0x8] sm:$0xff] %v705_v40  ;;  %501 = vst [vmem:[#allocation10 + $0x48] sm:$0xff] %v717_v41  ;;  %v362_v42 = vpop.f32.mrb[1].mxu0  ;;  %v402_v43 = vpop.f32.mrb[1].mxu1 }
 0x1f7   :  { %492 = vst [vmem:[#allocation10] sm:$0xff] %v362_v42  ;;  %500 = vst [vmem:[#allocation10 + $0x40] sm:$0xff] %v402_v43 }
 0x1f9   :  { %v708_v44 = vpop.f32.mrb[2].mxu0  ;;  %v720_v45 = vpop.f32.mrb[2].mxu1 }
 0x1fa   :  { %495 = vst [vmem:[#allocation10 + $0x18] sm:$0xff] %v708_v44  ;;  %503 = vst [vmem:[#allocation10 + $0x58] sm:$0xff] %v720_v45  ;;  %v372_v46 = vpop.f32.mrb[3].mxu0  ;;  %v412_v47 = vpop.f32.mrb[3].mxu1 }
 0x1fb   :  { %494 = vst [vmem:[#allocation10 + $0x10] sm:$0xff] %v372_v46  ;;  %502 = vst [vmem:[#allocation10 + $0x50] sm:$0xff] %v412_v47 }
 0x1fd   :  { %v711_v48 = vpop.f32.mrb[4].mxu0  ;;  %v723_v49 = vpop.f32.mrb[4].mxu1 }
 0x1fe   :  { %497 = vst [vmem:[#allocation10 + $0x28] sm:$0xff] %v711_v48  ;;  %505 = vst [vmem:[#allocation10 + $0x68] sm:$0xff] %v723_v49  ;;  %v382_v50 = vpop.f32.mrb[5].mxu0  ;;  %v422_v51 = vpop.f32.mrb[5].mxu1 }
 0x1ff   :  { %496 = vst [vmem:[#allocation10 + $0x20] sm:$0xff] %v382_v50  ;;  %504 = vst [vmem:[#allocation10 + $0x60] sm:$0xff] %v422_v51 }
 0x201   :  { %v714_v52 = vpop.f32.mrb[6].mxu0  ;;  %v726_v53 = vpop.f32.mrb[6].mxu1 }
 0x202   :  { %499 = vst [vmem:[#allocation10 + $0x38] sm:$0xff] %v714_v52  ;;  %507 = vst [vmem:[#allocation10 + $0x78] sm:$0xff] %v726_v53  ;;  %v392_v54 = vpop.f32.mrb[7].mxu0  ;;  %v432_v55 = vpop.f32.mrb[7].mxu1 }
 0x203   :  { %498 = vst [vmem:[#allocation10 + $0x30] sm:$0xff] %v392_v54  ;;  %506 = vst [vmem:[#allocation10 + $0x70] sm:$0xff] %v432_v55 }
 0x204   :  { %1064 = shalt.err (!%p1061_p7)
}
 0x205   :  { %s1065_s7 = scalar_lea.hbm %s1339_s3, 2048 }
 0x206   :  { %p1066_p8 = scmp.ne.s32.totalorder %s1339_s3, %s1065_s7  ;;  %p1069_p9 = scmp.lt.u32.totalorder %s1065_s7, %s1339_s3 }
 0x208   :  { %p1071_p10 = pnand %p1069_p9, %p1066_p8 }
 0x20a   :  { %1074 = shalt.err (!%p1071_p10)
}
 0x20b   :  { %519 = dma.vmem_to_hbm [thread:$0]  %s514_s10, 2048, %s1339_s3, [#allocation9], %s1093_s4, %s1093_s4, %s1094_s5  }
 0x20c   :  { %1085 = dma.done.wait [#allocation9], 2048  }
 0x20d   :  { %1086 = vsyncadd [#allocation9], 4294965248 }
 0x20e   :  { %523 = vsyncpa [#allocation8], 1 }
 0x20f   :  { %524 = vsyncpa [#allocation9], 1 }
 0x210   :  { %525 = vsyncmov [#allocation3] }
 0x213   :  { %s526_s19 = vpop.sfrf %525 }
 0x214   :  { %p631_p12 = scmp.ne.s32.totalorder %s526_s19, 0 }
 0x216   :  { %530 = shalt.err (%p631_p12)  }
 0x217   :  { %532 = vsyncmov [#allocation3 + $0x1] }
 0x21a   :  { %s533_s21 = vpop.sfrf %532 }
 0x21b   :  { %p632_p13 = scmp.ne.s32.totalorder %s533_s21, 0 }
 0x21d   :  { %537 = shalt.err (%p632_p13)  }
 0x21e   :  { %539 = vsyncmov [#allocation3 + $0x2] }
 0x221   :  { %s540_s12 = vpop.sfrf %539 }
 0x222   :  { %p633_p0 = scmp.ne.s32.totalorder %s540_s12, 0 }
 0x224   :  { %544 = shalt.err (%p633_p0)  }
 0x225   :  { %546 = vsyncmov [#allocation3 + $0x3] }
 0x228   :  { %s547_s18 = vpop.sfrf %546 }
 0x229   :  { %p634_p1 = scmp.ne.s32.totalorder %s547_s18, 0 }
 0x22b   :  { %551 = shalt.err (%p634_p1)  }
 0x22c   :  { %553 = vsyncmov [#allocation3 + $0x4] }
 0x22f   :  { %s554_s3 = vpop.sfrf %553 }
 0x230   :  { %p635_p3 = scmp.ne.s32.totalorder %s554_s3, 0 }
 0x232   :  { %558 = shalt.err (%p635_p3)  }
 0x233   :  { %560 = vsyncmov [#allocation3 + $0x5] }
 0x236   :  { %s561_s4 = vpop.sfrf %560 }
 0x237   :  { %p636_p2 = scmp.ne.s32.totalorder %s561_s4, 0 }
 0x239   :  { %565 = shalt.err (%p636_p2)  }
 0x23a   :  { %567 = vsyncmov [#allocation3 + $0x6] }
 0x23d   :  { %s568_s5 = vpop.sfrf %567 }
 0x23e   :  { %p637_p11 = scmp.ne.s32.totalorder %s568_s5, 0 }
 0x240   :  { %572 = shalt.err (%p637_p11)  }
 0x241   :  { %574 = vsyncmov [#allocation3 + $0x7] }
 0x244   :  { %s575_s22 = vpop.sfrf %574 }
 0x245   :  { %p638_p4 = scmp.ne.s32.totalorder %s575_s22, 0 }
 0x247   :  { %579 = shalt.err (%p638_p4)  }

</bundles_post_ra>
